<compile_context>
chip_gen: v6e
topology: v6e:2x2x1
jax: 0.10.0
libtpu: 0.0.40
codegen_flags: <defaults>
</compile_context>

<pallas_src>
import jax
import jax.numpy as jnp
import numpy as np
from jax.experimental import pallas as pl
from jax.experimental.pallas import tpu as pltpu

_LANE = 128
_SUBLANE = 8


def _round_up(x: int, m: int) -> int:
    return (x + m - 1) // m * m


def _vmem_capacity_bytes() -> int:
    try:
        return int(pltpu.get_tpu_info().vmem_capacity_bytes)
    except Exception:
        return 64 * 1024 * 1024  # conservative default (v7x per-TC VMEM)


def _merge_linear_kernel(obs_ref, act_ref, w_obs_ref, w_act_ref, b_ref, out_ref):
    # Split-K formulation: two dots against the obs-rows / act-rows of W.T
    # replace concat([obs, act]) @ W.T — no scratch store/load round trip and
    # no masked vst at the lane-misaligned act column offset.
    mxu_dt = w_obs_ref.dtype
    acc = jnp.dot(obs_ref[...].astype(mxu_dt), w_obs_ref[...],
                  preferred_element_type=jnp.float32)
    acc = acc + jnp.dot(act_ref[...].astype(mxu_dt), w_act_ref[...],
                        preferred_element_type=jnp.float32)
    out_ref[...] = (acc + b_ref[...]).astype(out_ref.dtype)


def prepare_merge_linear_params(weight, bias, obs_dim, *, mxu_dtype=jnp.float32):
    """One-time parameter prep (hoisted out of the per-call path).

    weight: [out_size, in_size]  (PyTorch nn.Linear layout)
    bias:   [out_size]
    Returns (w_obs [obs_dim, n_pad], w_act [act_dim, n_pad], bias [1, n_pad] f32,
             out_size).  out_size is zero-padded to a multiple of 128 so kernel
    stores are lane-dense.
    """
    out_size, in_size = weight.shape
    act_dim = in_size - obs_dim
    assert act_dim > 0, "obs_dim must be smaller than in_size"
    n_pad = _round_up(out_size, _LANE)
    w_t = jnp.asarray(weight).T.astype(mxu_dtype)             # [in_size, out_size]
    w_t = jnp.pad(w_t, ((0, 0), (0, n_pad - out_size)))       # [in_size, n_pad]
    w_obs = w_t[:obs_dim]                                     # [obs_dim, n_pad]
    w_act = w_t[obs_dim:]                                     # [act_dim, n_pad]
    b_p = jnp.pad(jnp.asarray(bias, jnp.float32),
                  (0, n_pad - out_size)).reshape(1, n_pad)    # [1, n_pad]
    return w_obs, w_act, b_p, out_size


def action_obs_merge_linear_prepared(observation, action, w_obs, w_act, b_p,
                                     out_size, *, tm=1024, out_dtype=None):
    """Pallas forward with pre-prepared (split / transposed / padded) weights."""
    B, obs_dim = observation.shape
    B2, act_dim = action.shape
    assert B2 == B
    assert w_obs.shape[0] == obs_dim and w_act.shape[0] == act_dim
    n_pad = w_obs.shape[1]
    in_size = obs_dim + act_dim
    mxu_dtype = w_obs.dtype
    out_dtype = observation.dtype if out_dtype is None else out_dtype

    act_isz = jnp.dtype(observation.dtype).itemsize
    w_isz = jnp.dtype(mxu_dtype).itemsize
    out_isz = jnp.dtype(out_dtype).itemsize

    # ---- VMEM budget: generation-aware, with headroom for compiler scratch ---
    cap = _vmem_capacity_bytes()
    vmem_ceiling = int(cap * 0.85)  # ~54 MiB on v7x, ~109 MiB on v5e/v6e

    # ---- row tile (tm) -------------------------------------------------------
    b8 = _round_up(B, _SUBLANE)
    tm = max(_SUBLANE, _round_up(min(tm, b8), _SUBLANE))
    # Keep >=2 batch tiles for large batches so the "parallel" batch axis can be
    # sharded across v7x's two TensorCores (skip for tiny batches: no win there).
    if b8 // tm < 2 and b8 >= 512:
        tm = _round_up(pl.cdiv(b8, 2), _SUBLANE)

    # ---- output tile (tn): full width when the weight fits comfortably ------
    weight_bytes_full = in_size * n_pad * w_isz + n_pad * 4
    if weight_bytes_full <= vmem_ceiling // 4:
        tn = n_pad                               # 1-D batch grid, weight resident
    else:
        # Fallback: largest 256-aligned (else 128-aligned) divisor that fits.
        step = 256 if n_pad % 256 == 0 else _LANE
        tn = n_pad
        while tn > step and in_size * tn * w_isz + tn * 4 > vmem_ceiling // 4:
            tn -= step
            while n_pad % tn != 0 and tn > step:
                tn -= step

    def vmem_needed(tm_, tn_):
        stream = tm_ * in_size * act_isz + tm_ * tn_ * out_isz   # double-buffered
        resident = in_size * tn_ * w_isz + tn_ * 4
        return 2 * (stream + resident) + (1 << 20)

    while vmem_needed(tm, tn) > vmem_ceiling and tm > _SUBLANE:
        tm = max(_SUBLANE, _round_up(tm // 2, _SUBLANE))

    # ---- batch padding (only the ragged last tile, often zero) --------------
    b_pad = _round_up(B, tm)
    if b_pad != B:
        pad_rows = b_pad - B
        observation = jnp.pad(observation, ((0, pad_rows), (0, 0)))
        action = jnp.pad(action, ((0, pad_rows), (0, 0)))

    grid_b = b_pad // tm
    grid_n = n_pad // tn
    vmem_limit = int(min(max(vmem_needed(tm, tn), 32 * 1024 * 1024), vmem_ceiling))

    cost = pl.CostEstimate(
        flops=2 * b_pad * in_size * n_pad,
        transcendentals=0,
        bytes_accessed=(grid_n * b_pad * in_size * act_isz   # activations re-read per N tile
                        + in_size * n_pad * w_isz + n_pad * 4
                        + b_pad * n_pad * out_isz),
    )

    if grid_n == 1:
        # 1-D grid over batch: activations read once, weights/bias resident.
        grid = (grid_b,)
        in_specs = [
            pl.BlockSpec((tm, obs_dim), lambda i: (i, 0)),
            pl.BlockSpec((tm, act_dim), lambda i: (i, 0)),
            pl.BlockSpec((obs_dim, n_pad), lambda i: (0, 0)),
            pl.BlockSpec((act_dim, n_pad), lambda i: (0, 0)),
            pl.BlockSpec((1, n_pad), lambda i: (0, 0)),
        ]
        out_specs = pl.BlockSpec((tm, n_pad), lambda i: (i, 0))
        dim_sem = ("parallel",)
    else:
        # Fallback for huge weights: N outer / B inner so each weight slab stays
        # resident while batch tiles stream under it.
        grid = (grid_n, grid_b)
        in_specs = [
            pl.BlockSpec((tm, obs_dim), lambda j, i: (i, 0)),
            pl.BlockSpec((tm, act_dim), lambda j, i: (i, 0)),
            pl.BlockSpec((obs_dim, tn), lambda j, i: (0, j)),
            pl.BlockSpec((act_dim, tn), lambda j, i: (0, j)),
            pl.BlockSpec((1, tn), lambda j, i: (0, j)),
        ]
        out_specs = pl.BlockSpec((tm, tn), lambda j, i: (i, j))
        dim_sem = ("parallel", "parallel")

    out_padded = pl.pallas_call(
        _merge_linear_kernel,
        out_shape=jax.ShapeDtypeStruct((b_pad, n_pad), out_dtype),
        grid_spec=pltpu.PrefetchScalarGridSpec(
            num_scalar_prefetch=0,
            grid=grid,
            in_specs=in_specs,
            out_specs=out_specs,
        ),
        compiler_params=pltpu.CompilerParams(
            dimension_semantics=dim_sem,
            vmem_limit_bytes=vmem_limit,
        ),
        cost_estimate=cost,
    )(observation, action, w_obs, w_act, b_p)

    return out_padded[:B, :out_size]


def action_obs_merge_linear(observation, action, weight, bias, *,
                            mxu_dtype=jnp.float32, tm=1024, out_dtype=None):
    """Convenience wrapper matching ActionObsMergeLinear.forward(obs, act).

    mxu_dtype=jnp.float32 (default) matches PyTorch nn.Linear numerics; pass
    jnp.bfloat16 to opt in to bf16 MXU operands (f32 accumulation) for speed.
    """
    obs_dim = observation.shape[-1]
    w_obs, w_act, b_p, out_size = prepare_merge_linear_params(
        weight, bias, obs_dim, mxu_dtype=mxu_dtype)
    return action_obs_merge_linear_prepared(observation, action, w_obs, w_act, b_p,
                                            out_size, tm=tm, out_dtype=out_dtype)


if __name__ == "__main__":
    # Small shapes consistent with the module: obs_dim + act_dim = in_size.
    B, obs_dim, act_dim, out_size = 8, 16, 16, 32
    in_size = obs_dim + act_dim

    key = jax.random.PRNGKey(0)
    k_obs, k_act, k_w, k_b = jax.random.split(key, 4)

    observation = jax.random.normal(k_obs, (B, obs_dim), dtype=jnp.float32)
    action = jax.random.normal(k_act, (B, act_dim), dtype=jnp.float32)

    # Deterministic nn.Linear-style init: U(-1/sqrt(in_size), 1/sqrt(in_size)).
    bound = 1.0 / np.sqrt(in_size)
    weight = jax.random.uniform(k_w, (out_size, in_size), jnp.float32, -bound, bound)
    bias = jax.random.uniform(k_b, (out_size,), jnp.float32, -bound, bound)

    # Reference: concat then dense (matches PyTorch forward exactly).
    ref = jnp.concatenate([observation, action], axis=-1) @ weight.T + bias

    # Default path: f32 MXU operands, matches PyTorch numerics tightly.
    out_f32 = action_obs_merge_linear(observation, action, weight, bias)
    out_f32 = jax.block_until_ready(out_f32)
    np.testing.assert_allclose(np.asarray(out_f32), np.asarray(ref),
                               rtol=1e-5, atol=1e-5)

    # Opt-in bandwidth path: bf16 MXU operands, f32 accumulation (looser tol).
    out_bf16 = action_obs_merge_linear(observation, action, weight, bias,
                                       mxu_dtype=jnp.bfloat16)
    out_bf16 = jax.block_until_ready(out_bf16)
    np.testing.assert_allclose(np.asarray(out_bf16), np.asarray(ref),
                               rtol=5e-2, atol=5e-2)

    print("KERNEL_OK")
</pallas_src>

<mosaic_0001>
module attributes {stable_mosaic.version = 11 : i64} {
  func.func @_merge_linear_kernel(%arg0: i32, %arg1: memref<8x16xf32, #tpu.memory_space<vmem>>, %arg2: memref<8x16xf32, #tpu.memory_space<vmem>>, %arg3: memref<16x128xf32, #tpu.memory_space<vmem>>, %arg4: memref<16x128xf32, #tpu.memory_space<vmem>>, %arg5: memref<1x128xf32, #tpu.memory_space<vmem>>, %arg6: memref<8x128xf32, #tpu.memory_space<vmem>>) attributes {dimension_semantics = [#tpu.dimension_semantics<parallel>], iteration_bounds = array<i64: 1>, scalar_prefetch = 0 : i64, scratch_operands = 0 : i64, tpu.core_type = #tpu.core_type<tc>, window_params = [{transform_indices = @transform_0, window_bounds = array<i64: 8, 16>}, {transform_indices = @transform_1, window_bounds = array<i64: 8, 16>}, {pipeline_mode = #tpu.pipeline_mode<synchronous>, transform_indices = @transform_2, window_bounds = array<i64: 16, 128>}, {pipeline_mode = #tpu.pipeline_mode<synchronous>, transform_indices = @transform_3, window_bounds = array<i64: 16, 128>}, {pipeline_mode = #tpu.pipeline_mode<synchronous>, transform_indices = @transform_4, window_bounds = array<i64: 1, 128>}, {transform_indices = @transform_5, window_bounds = array<i64: 8, 128>}]} {
    %c0 = arith.constant 0 : index
    %c0_0 = arith.constant 0 : index
    %0 = vector.load %arg1[%c0, %c0_0] : memref<8x16xf32, #tpu.memory_space<vmem>>, vector<8x16xf32>
    %c0_1 = arith.constant 0 : index
    %c0_2 = arith.constant 0 : index
    %1 = vector.load %arg3[%c0_1, %c0_2] : memref<16x128xf32, #tpu.memory_space<vmem>>, vector<16x128xf32>
    %cst = arith.constant dense<0.000000e+00> : vector<8x128xf32>
    %2 = tpu.matmul %0, %1, %cst {dimension_numbers = #tpu.dot_dimension_numbers<[1], [0], [0], [1], [0, 0, 1, 1], [], []>} : vector<8x16xf32>, vector<16x128xf32>, vector<8x128xf32> -> vector<8x128xf32>
    %c0_3 = arith.constant 0 : index
    %c0_4 = arith.constant 0 : index
    %3 = vector.load %arg2[%c0_3, %c0_4] : memref<8x16xf32, #tpu.memory_space<vmem>>, vector<8x16xf32>
    %c0_5 = arith.constant 0 : index
    %c0_6 = arith.constant 0 : index
    %4 = vector.load %arg4[%c0_5, %c0_6] : memref<16x128xf32, #tpu.memory_space<vmem>>, vector<16x128xf32>
    %cst_7 = arith.constant dense<0.000000e+00> : vector<8x128xf32>
    %5 = tpu.matmul %3, %4, %cst_7 {dimension_numbers = #tpu.dot_dimension_numbers<[1], [0], [0], [1], [0, 0, 1, 1], [], []>} : vector<8x16xf32>, vector<16x128xf32>, vector<8x128xf32> -> vector<8x128xf32>
    %6 = arith.addf %2, %5 : vector<8x128xf32>
    %c0_8 = arith.constant 0 : index
    %c0_9 = arith.constant 0 : index
    %7 = vector.load %arg5[%c0_8, %c0_9] : memref<1x128xf32, #tpu.memory_space<vmem>>, vector<1x128xf32>
    %8 = vector.broadcast %7 : vector<1x128xf32> to vector<8x128xf32>
    %9 = arith.addf %6, %8 : vector<8x128xf32>
    %c0_10 = arith.constant 0 : index
    %c0_11 = arith.constant 0 : index
    %10 = vector.load %arg6[%c0_10, %c0_11] : memref<8x128xf32, #tpu.memory_space<vmem>>, vector<8x128xf32>
    tpu.vector_store %arg6[%c0_10, %c0_11], %9 {strides = array<i32>} : memref<8x128xf32, #tpu.memory_space<vmem>>, vector<8x128xf32>,
    return
  }
  func.func @transform_0(%arg0: i32) -> (i32, i32) {
    %c0_i32 = arith.constant 0 : i32
    %c0_i32_0 = arith.constant 0 : i32
    return %arg0, %c0_i32 : i32, i32
  }
  func.func @transform_1(%arg0: i32) -> (i32, i32) {
    %c0_i32 = arith.constant 0 : i32
    %c0_i32_0 = arith.constant 0 : i32
    return %arg0, %c0_i32 : i32, i32
  }
  func.func @transform_2(%arg0: i32) -> (i32, i32) {
    %c0_i32 = arith.constant 0 : i32
    %c0_i32_0 = arith.constant 0 : i32
    %c0_i32_1 = arith.constant 0 : i32
    return %c0_i32, %c0_i32_0 : i32, i32
  }
  func.func @transform_3(%arg0: i32) -> (i32, i32) {
    %c0_i32 = arith.constant 0 : i32
    %c0_i32_0 = arith.constant 0 : i32
    %c0_i32_1 = arith.constant 0 : i32
    return %c0_i32, %c0_i32_0 : i32, i32
  }
  func.func @transform_4(%arg0: i32) -> (i32, i32) {
    %c0_i32 = arith.constant 0 : i32
    %c0_i32_0 = arith.constant 0 : i32
    %c0_i32_1 = arith.constant 0 : i32
    return %c0_i32, %c0_i32_0 : i32, i32
  }
  func.func @transform_5(%arg0: i32) -> (i32, i32) {
    %c0_i32 = arith.constant 0 : i32
    %c0_i32_0 = arith.constant 0 : i32
    return %arg0, %c0_i32 : i32, i32
  }
}

</mosaic_0001>

<bundles_post_ra>
// kernel: tpu_custom_call.1
= control target key start
LH: loop header
LB: loop body
LE: loop exit
PB: predicated region body
PF: predicated region fallthrough
CT: control target
= control target key end

     0   :  { %10 = vsyncpa [#allocation3], 0  ;;  %s448_s0 = inlined_call_operand.hbm [shape: f32[8,16], index: 0, kind: input, shape index: {}]   ;;  %s449_s1 = inlined_call_operand.hbm [shape: f32[8,16], index: 1, kind: input, shape index: {}]   ;;  %s450_s2 = inlined_call_operand.hbm [shape: f32[16,128], index: 2, kind: input, shape index: {}]   ;;  %s451_s3 = inlined_call_operand.hbm [shape: f32[16,128], index: 3, kind: input, shape index: {}]   ;;  %s452_s4 = inlined_call_operand.vmem [shape: f32[1,128], index: 4, kind: input, shape index: {}]   ;;  %s453_s5 = inlined_call_operand.hbm [shape: f32[8,128], index: 5, kind: output, shape index: {}]  }
   0x1   :  { %11 = vsyncpa [#allocation6], 0 }
   0x2   :  { %12 = vsyncpa [#allocation9], 0 }
   0x3   :  { %13 = vsyncpa [#allocation4], 0  ;;  %s391_s18 = smov [#allocation5]   ;;  %s392_s20 = smov [#allocation2]  }
   0x4   :  { %s30_s19 = sshll.u32 %s391_s18, 4  ;;  %s20_s21 = sshll.u32 %s392_s20, 4  ;;  %s31_s19 = int_to_ptr.vmem [resolvable:$true] %s30_s19  ;;  %s21_s21 = int_to_ptr.vmem [resolvable:$true] %s20_s21 }
   0x5   :  { %s291_s22 = scalar_lea.vmem %s31_s19, 128  ;;  %p296_p1 = scmp.lt.s32.totalorder %s31_s19, %s31_s19 }
   0x6   :  { %p292_p0 = scmp.ne.s32.totalorder %s31_s19, %s291_s22  ;;  %p297_p2 = scmp.lt.s32.totalorder %s291_s22, %s291_s22 }
   0x8   :  { %p298_p3 = por %p297_p2, %p296_p1 }
   0xa   :  { %p299_p4 = pnand %p298_p3, %p292_p0 }
   0xc   :  { %302 = shalt.err (!%p299_p4)
}
   0xd   :  { %33 = dma.hbm_to_vmem [thread:$0]  %s449_s1, 128, %s31_s19, [#allocation6]  }
   0xe   :  { %s311_s25 = scalar_lea.vmem %s21_s21, 128  ;;  %p316_p6 = scmp.lt.s32.totalorder %s21_s21, %s21_s21 }
   0xf   :  { %p312_p5 = scmp.ne.s32.totalorder %s21_s21, %s311_s25  ;;  %p317_p7 = scmp.lt.s32.totalorder %s311_s25, %s311_s25 }
  0x11   :  { %p318_p8 = por %p317_p7, %p316_p6 }
  0x13   :  { %p319_p9 = pnand %p318_p8, %p312_p5 }
  0x15   :  { %322 = shalt.err (!%p319_p9)
}
  0x16   :  { %23 = dma.hbm_to_vmem [thread:$0]  %s448_s0, 128, %s21_s21, [#allocation3]  }
  0x17   :  { %s393_s28 = smov [#allocation7]  }
  0x18   :  { %s39_s29 = sshll.u32 %s393_s28, 4  ;;  %s40_s29 = int_to_ptr.vmem [resolvable:$true] %s39_s29 }
  0x19   :  { %s331_s30 = scalar_lea.vmem %s40_s29, 256  ;;  %p336_p11 = scmp.lt.s32.totalorder %s40_s29, %s40_s29 }
  0x1a   :  { %p332_p10 = scmp.ne.s32.totalorder %s40_s29, %s331_s30  ;;  %p337_p12 = scmp.lt.s32.totalorder %s331_s30, %s331_s30 }
  0x1c   :  { %p338_p13 = por %p337_p12, %p336_p11 }
  0x1e   :  { %p339_p0 = pnand %p338_p13, %p332_p10 }
  0x20   :  { %342 = shalt.err (!%p339_p0)
}
  0x21   :  { %s394_s1 = smov 128   ;;  %s395_s6 = smov 8  }
  0x22   :  { %45 = dma.hbm_to_vmem [thread:$0]  %s450_s2, 256, %s40_s29, [#allocation6], %s394_s1, %s394_s1, %s395_s6  }
  0x23   :  { %s396_s9 = smov [#allocation8]  }
  0x24   :  { %s51_s10 = sshll.u32 %s396_s9, 4  ;;  %s52_s10 = int_to_ptr.vmem [resolvable:$true] %s51_s10 }
  0x25   :  { %s351_s0 = scalar_lea.vmem %s52_s10, 256  ;;  %p356_p2 = scmp.lt.s32.totalorder %s52_s10, %s52_s10 }
  0x26   :  { %p352_p1 = scmp.ne.s32.totalorder %s52_s10, %s351_s0  ;;  %p357_p3 = scmp.lt.s32.totalorder %s351_s0, %s351_s0 }
  0x28   :  { %p358_p4 = por %p357_p3, %p356_p2 }
  0x2a   :  { %p359_p5 = pnand %p358_p4, %p352_p1 }
  0x2c   :  { %362 = shalt.err (!%p359_p5)
}
  0x2d   :  { %57 = dma.hbm_to_vmem [thread:$0]  %s451_s3, 256, %s52_s10, [#allocation9], %s394_s1, %s394_s1, %s395_s6  }
  0x2e   :  { %383 = dma.done.wait [#allocation3], 128  }
  0x2f   :  { %384 = vsyncadd [#allocation3], 4294967168 }
  0x30   :  { %385 = dma.done.wait [#allocation6], 384  }
  0x31   :  { %386 = vsyncadd [#allocation6], 4294966912 }
  0x32   :  { %387 = dma.done.wait [#allocation9], 256  }
  0x33   :  { %388 = vsyncadd [#allocation9], 4294967040  ;;  %v397_v0 = vmov 0.0   ;;  %vm398_vm0 = vmmov 0   ;;  %v77_v1 = vld [vmem:[#allocation8 + $0x8] sm:$0xff]  ;;  %v74_v2 = vld [vmem:[#allocation7 + $0x8] sm:$0xff] }
  0x34   :  { %260 = vmatprep.subr.mxu0 %v397_v0  ;;  %267 = vmatprep.subr.mxu1 %v397_v0  ;;  %v76_v3 = vld [vmem:[#allocation8] sm:$0xff]  ;;  %v73_v4 = vld [vmem:[#allocation7] sm:$0xff]  ;;  %v75_v5 = vld [vmem:[#allocation5] sm:$0xff]  ;;  %vm78_vm1 = vcmask 130048   ;;  %s399_s13 = smov [#allocation10]  }
  0x35   :  { %264 = vmatprep.mubr.msk.f32.mxu0 %vm398_vm0, %v397_v0  ;;  %271 = vmatprep.mubr.msk.f32.mxu1 %vm398_vm0, %v397_v0  ;;  %v72_v6 = vld [vmem:[#allocation2] sm:$0xff]  ;;  %s240_s14 = sshll.u32 %s399_s13, 4  ;;  %s241_s14 = int_to_ptr.vmem [resolvable:$true] %s240_s14 }
  0x36   :  { %261 = vmatpush3.msra.mxu0 %v77_v1  ;;  %268 = vmatpush3.msra.mxu1 %v74_v2  ;;  %v253_v9 = vld [vmem:[%s452_s4] ss:$0 sm:$0xff]  ;;  %s363_s15 = scalar_lea.vmem %s241_s14, 128  ;;  %p368_p7 = scmp.lt.s32.totalorder %s241_s14, %s241_s14 }
  0x37   :  { %262 = vmatprep.subr.mxu0 %v397_v0  ;;  %269 = vmatprep.subr.mxu1 %v397_v0  ;;  %p364_p6 = scmp.ne.s32.totalorder %s241_s14, %s363_s15  ;;  %p369_p8 = scmp.lt.s32.totalorder %s363_s15, %s363_s15 }
  0x38   :  { %263 = vmatpush3.msra.mxu0 %v76_v3  ;;  %270 = vmatpush3.msra.mxu1 %v73_v4 }
  0x39   :  { %265 = vmatmul.mubr.msk.f32.vlgmr.msra.gmra.mxu0 %vm78_vm1, %v75_v5  ;;  %272 = vmatmul.mubr.msk.f32.vlgmr.msra.gmra.mxu1 %vm78_vm1, %v72_v6  ;;  %p370_p9 = por %p369_p8, %p368_p7 }
  0x3b   :  { %p371_p10 = pnand %p370_p9, %p364_p6 }
  0xf9   :  { %v148_v7 = vpop.f32.mrf.mxu0  ;;  %v221_v8 = vpop.f32.mrf.mxu1 }
  0xfa   :  { %v222_v10 = vadd.f32 %v221_v8, %v148_v7 }
  0xfb   :  { %v266_v11 = vpop.f32.mrf.mxu0  ;;  %v273_v12 = vpop.f32.mrf.mxu1 }
  0xfc   :  { %v232_v13 = vadd.f32 %v253_v9, %v222_v10 }
  0xfe   :  { %233 = vst [vmem:[#allocation10] sm:$0xff] %v232_v13 }
  0xff   :  { %374 = shalt.err (!%p371_p10)
}
 0x100   :  { %243 = dma.vmem_to_hbm [thread:$0]  %s241_s14, 128, %s453_s5, [#allocation4]  }
 0x101   :  { %389 = dma.done.wait [#allocation4], 128  }
 0x102   :  { %390 = vsyncadd [#allocation4], 4294967168 }
 0x103   :  { %247 = vsyncpa [#allocation3], 1 }
 0x104   :  { %248 = vsyncpa [#allocation6], 1 }
 0x105   :  { %249 = vsyncpa [#allocation9], 1 }
 0x106   :  { %250 = vsyncpa [#allocation4], 1 }

</bundles_post_ra>
